<compile_context>
chip_gen: v5e
topology: v5e:2x2
jax: 0.10.0
libtpu: 0.0.40
codegen_flags: <defaults>
</compile_context>

<pallas_src>
import functools

import jax
import jax.numpy as jnp
from jax.experimental import pallas as pl
from jax.experimental.pallas import tpu as pltpu


def _skipgram_kernel(hid_ref, wt_ref, o_ref):
    """One vocab tile j: out[:, j*TN:(j+1)*TN] = hidden @ wt_t_tile."""
    # hid_ref: [B, E] (compute dtype, VMEM-resident, invariant across the grid)
    # wt_ref : [E, TN] (compute dtype, streamed tile of the pre-transposed WT)
    o_ref[...] = jnp.dot(
        hid_ref[...], wt_ref[...], preferred_element_type=jnp.float32
    ).astype(o_ref.dtype)


def _pick_block_v(V, E, itemsize, block_v):
    """Lane-dense vocab tile, ~4 MiB per (double-buffered) WT tile by default."""
    if block_v is None:
        target_bytes = 4 * 1024 * 1024
        block_v = max(128, (target_bytes // max(E * itemsize, 1)) // 128 * 128)
    if block_v >= V:
        return V                      # single tile == full array dim (allowed)
    return max(128, (block_v // 128) * 128)


def skipgram_logits_from_hidden(hidden, wt_t, *, block_v=None,
                                vmem_limit_bytes=48 * 1024 * 1024):
    """Hot path: logits = hidden @ wt_t.

    hidden: [B, E]  gathered embedding rows (any float dtype).
    wt_t  : [E, V]  pre-transposed WT.weight (store persistently in bf16).
    Returns logits [B, V] float32.
    """
    B, E = hidden.shape
    E2, V = wt_t.shape
    assert E == E2, (hidden.shape, wt_t.shape)

    itemsize = jnp.dtype(wt_t.dtype).itemsize
    bv = _pick_block_v(V, E, itemsize, block_v)
    n_j = pl.cdiv(V, bv)

    # Tiny [B, E] operand; match the streamed weight's compute dtype.
    hidden = hidden.astype(wt_t.dtype)

    cost = pl.CostEstimate(
        flops=2 * B * V * E,
        transcendentals=0,
        bytes_accessed=V * E * itemsize + B * E * itemsize + B * V * 4,
    )

    return pl.pallas_call(
        _skipgram_kernel,
        out_shape=jax.ShapeDtypeStruct((B, V), jnp.float32),
        grid=(n_j,),
        in_specs=[
            pl.BlockSpec((B, E), lambda j: (0, 0)),     # hidden, grid-invariant
            pl.BlockSpec((E, bv), lambda j: (0, j)),    # WT tile, streamed
        ],
        out_specs=pl.BlockSpec((B, bv), lambda j: (0, j)),
        compiler_params=pltpu.CompilerParams(
            dimension_semantics=("parallel",),          # vocab tiles independent
            vmem_limit_bytes=vmem_limit_bytes,
        ),
        cost_estimate=cost,
    )(hidden, wt_t)


@functools.partial(jax.jit, static_argnames=("block_v", "vmem_limit_bytes"))
def skipgram_logits_from_ids(word_ids, emb_table, wt_t, *, block_v=None,
                             vmem_limit_bytes=48 * 1024 * 1024):
    """word_ids: [B] int32, emb_table: [V, E] (= W.weight.T), wt_t: [E, V]."""
    hidden = jnp.take(emb_table, word_ids.astype(jnp.int32), axis=0)  # [B, E]
    return skipgram_logits_from_hidden(
        hidden, wt_t, block_v=block_v, vmem_limit_bytes=vmem_limit_bytes)


def word2vec_skipgram_forward(x_onehot, w_weight, wt_weight, *,
                              compute_dtype=jnp.bfloat16, **kwargs):
    """Module-compatible entry point (one-hot X like the PyTorch forward).

    x_onehot : [B, V] one-hot rows
    w_weight : [E, V]  (= W.weight)
    wt_weight: [V, E]  (= WT.weight)
    Exploits the one-hot structure: X @ W.weight.T == W.weight.T[argmax(X)].
    NOTE: in a real pipeline keep emb_table [V, E] and wt_t [E, V] (bf16)
    stored persistently instead of re-deriving them per call.
    """
    word_ids = jnp.argmax(x_onehot, axis=-1).astype(jnp.int32)
    emb_table = jnp.asarray(w_weight.T)                              # [V, E]
    wt_t = jnp.asarray(wt_weight.T, dtype=compute_dtype)             # [E, V]
    return skipgram_logits_from_ids(word_ids, emb_table, wt_t, **kwargs)


if __name__ == "__main__":
    # Small shapes consistent with the module; block_v=128 so the demo actually
    # exercises the vocab-tile grid (512/128 = 4 steps).
    batch = 8
    voc_size = 512
    emb_size = 64
    block_v = 128

    key = jax.random.PRNGKey(0)
    k_idx, k_w, k_wt = jax.random.split(key, 3)

    word_ids = jax.random.randint(k_idx, (batch,), 0, voc_size, dtype=jnp.int32)
    X = jax.nn.one_hot(word_ids, voc_size, dtype=jnp.float32)  # [B, V]

    # Deterministic parameter init (nn.Linear default-like uniform).
    bound_w = 1.0 / (voc_size ** 0.5)
    bound_wt = 1.0 / (emb_size ** 0.5)
    W_weight = jax.random.uniform(k_w, (emb_size, voc_size), jnp.float32,
                                  -bound_w, bound_w)     # like self.W.weight
    WT_weight = jax.random.uniform(k_wt, (voc_size, emb_size), jnp.float32,
                                   -bound_wt, bound_wt)  # like self.WT.weight

    # One-time setup OUTSIDE the hot path: gather-layout embedding table and
    # pre-transposed persistent-bf16 output weights.
    emb_table = jnp.asarray(W_weight.T)                       # [V, E] f32
    wt_t_bf16 = jnp.asarray(WT_weight.T, dtype=jnp.bfloat16)  # [E, V] bf16

    out = skipgram_logits_from_ids(word_ids, emb_table, wt_t_bf16,
                                   block_v=block_v)
    out = jax.block_until_ready(out)

    # Also exercise the module-interface wrapper (one-hot X in, logits out).
    out2 = jax.block_until_ready(
        word2vec_skipgram_forward(X, W_weight, WT_weight, block_v=block_v))

    # Reference check in plain JAX (same math as the PyTorch forward).
    ref = (X @ W_weight.T) @ WT_weight.T
    assert out.shape == (batch, voc_size)
    # bf16 operands in the matmul -> loosened tolerance (MXU accumulates f32).
    assert jnp.allclose(out, ref, atol=3e-3, rtol=3e-2), \
        float(jnp.max(jnp.abs(out - ref)))
    assert jnp.allclose(out2, ref, atol=3e-3, rtol=3e-2)

    print("KERNEL_OK")
</pallas_src>

<mosaic_0001>
module attributes {stable_mosaic.version = 11 : i64} {
  func.func @_skipgram_kernel(%arg0: i32, %arg1: memref<8x64xbf16, #tpu.memory_space<vmem>>, %arg2: memref<64x128xbf16, #tpu.memory_space<vmem>>, %arg3: memref<8x128xf32, #tpu.memory_space<vmem>>) attributes {dimension_semantics = [#tpu.dimension_semantics<parallel>], iteration_bounds = array<i64: 4>, scalar_prefetch = 0 : i64, scratch_operands = 0 : i64, tpu.core_type = #tpu.core_type<tc>, window_params = [{pipeline_mode = #tpu.pipeline_mode<synchronous>, transform_indices = @transform_0, window_bounds = array<i64: 8, 64>}, {transform_indices = @transform_1, window_bounds = array<i64: 64, 128>}, {transform_indices = @transform_2, window_bounds = array<i64: 8, 128>}]} {
    %c0 = arith.constant 0 : index
    %c0_0 = arith.constant 0 : index
    %0 = vector.load %arg1[%c0, %c0_0] : memref<8x64xbf16, #tpu.memory_space<vmem>>, vector<8x64xbf16>
    %c0_1 = arith.constant 0 : index
    %c0_2 = arith.constant 0 : index
    %1 = vector.load %arg2[%c0_1, %c0_2] : memref<64x128xbf16, #tpu.memory_space<vmem>>, vector<64x128xbf16>
    %cst = arith.constant dense<0.000000e+00> : vector<8x128xf32>
    %2 = tpu.matmul %0, %1, %cst {dimension_numbers = #tpu.dot_dimension_numbers<[1], [0], [0], [1], [0, 0, 1, 1], [], []>} : vector<8x64xbf16>, vector<64x128xbf16>, vector<8x128xf32> -> vector<8x128xf32>
    %c0_3 = arith.constant 0 : index
    %c0_4 = arith.constant 0 : index
    %3 = vector.load %arg3[%c0_3, %c0_4] : memref<8x128xf32, #tpu.memory_space<vmem>>, vector<8x128xf32>
    tpu.vector_store %arg3[%c0_3, %c0_4], %2 {strides = array<i32>} : memref<8x128xf32, #tpu.memory_space<vmem>>, vector<8x128xf32>,
    return
  }
  func.func @transform_0(%arg0: i32) -> (i32, i32) {
    %c0_i32 = arith.constant 0 : i32
    %c0_i32_0 = arith.constant 0 : i32
    %c0_i32_1 = arith.constant 0 : i32
    return %c0_i32, %c0_i32_0 : i32, i32
  }
  func.func @transform_1(%arg0: i32) -> (i32, i32) {
    %c0_i32 = arith.constant 0 : i32
    %c0_i32_0 = arith.constant 0 : i32
    return %c0_i32, %arg0 : i32, i32
  }
  func.func @transform_2(%arg0: i32) -> (i32, i32) {
    %c0_i32 = arith.constant 0 : i32
    %c0_i32_0 = arith.constant 0 : i32
    return %c0_i32, %arg0 : i32, i32
  }
}

</mosaic_0001>

<bundles_post_ra>
// kernel: skipgram_logits_from_ids.1
= control target key start
LH: loop header
LB: loop body
LE: loop exit
PB: predicated region body
PF: predicated region fallthrough
CT: control target
= control target key end

     0   :  { %7 = vsyncpa [#allocation4], 0  ;;  %s592_s0 = inlined_call_operand.vmem [shape: bf16[8,64], index: 0, kind: input, shape index: {}]   ;;  %s593_s1 = inlined_call_operand.vmem [shape: bf16[64,512], index: 1, kind: input, shape index: {}]   ;;  %s594_s2 = inlined_call_operand.hbm [shape: f32[8,512], index: 2, kind: output, shape index: {}]  }
   0x1   :  { %9 = vsyncpa [#allocation4 + $0x1], 0  ;;  %s497_s9 = smov 0   ;;  %s499_s10 = smov 0  }
   0x2   :  { %s501_s11 = smov 0   ;;  %s503_s12 = smov 0  }
   0x3 LB: > { %s345_s13 = sadd.s32 4294967295, %s480_s12   ;;  %s346_s14 = sadd.s32 4294967294, %s480_s12   ;;  %s480_s12 = sphi %s503_s12, %s600_s12   ;;  %s476_s11 = sphi %s501_s11, %s599_s11   ;;  %s472_s10 = sphi %s499_s10, %s598_s10   ;;  %s468_s9 = sphi %s497_s9, %s597_s9  }
   0x4   : > { %s520_s15 = sadd.s32 1, %s480_s12   ;;  %s43_s16 = sadd.s32 1, %s476_s11 }
   0x5   : > { %s40_s17 = ssub.s32 %s480_s12, %s520_s15  ;;  %p50_p0 = scmp.ne.s32.totalorder %s476_s11, %s472_s10 }
   0x6   : > { %p41_p1 = scmp.eq.s32.totalorder %s40_s17, 0  ;;  %p51_p2 = scmp.eq.s32.totalorder %s480_s12, 0 }
   0x7   : > { %p80_p3 = scmp.eq.s32.totalorder %s345_s13, 3  ;;  %p85_p4 = scmp.ne.s32.totalorder %s472_s10, %s468_s9 }
   0x8   : > { %s533_s18 = scalar_select %p41_p1, %s476_s11, %s43_s16  }
   0x9   : > { %p52_p5 = por %p51_p2, %p50_p0  ;;  %p535_p6 = por %p80_p3, %p50_p0 }
   0xa   : > { %p86_p7 = scmp.eq.s32.totalorder %s346_s14, 3  ;;  %p348_p9 = scmp.ge.s32.totalorder %s480_s12, 4 }
   0xc   : > { %p539_p8 = por %p86_p7, %p85_p4  ;;  %105 = sbr.rel (%p348_p9) target bundleno = 29 (0x1d), region = 20 }
  0x11   : > { %108 = sbr.rel (!%p52_p5) target bundleno = 29 (0x1d), region = 24  ;;  %s110_s21 = sand.u32 (%p52_p5), 1, %s476_s11  }
  0x12   : > { %s350_s22 = sshll.u32 (%p52_p5), %s480_s12, 2  ;;  %s349_s23 = sshll.u32 (%p52_p5), %s110_s21, 5 }
  0x13   : > { %s114_s26 = scalar_lea.vmem (%p52_p5), %s593_s1, %s350_s22  ;;  %s112_s27 = scalar_lea.vmem (%p52_p5), [#allocation2], %s349_s23 }
  0x14   : > { %v131_v0 = vld [vmem:[%s114_s26] sm:$0xf] (%p52_p5)  ;;  %v133_v1 = vld [vmem:[%s114_s26 + $0x10] sm:$0xf] (%p52_p5) }
  0x15   : > { %132 = vst [vmem:[%s112_s27] sm:$0xf] (%p52_p5), %v131_v0  ;;  %v135_v2 = vld [vmem:[%s114_s26 + $0x20] sm:$0xf] (%p52_p5)  ;;  %v137_v3 = vld [vmem:[%s114_s26 + $0x30] sm:$0xf] (%p52_p5) }
  0x16   : > { %134 = vst [vmem:[%s112_s27 + $0x4] sm:$0xf] %v133_v1  ;;  %v139_v4 = vld [vmem:[%s114_s26 + $0x40] sm:$0xf]  ;;  %v141_v5 = vld [vmem:[%s114_s26 + $0x50] sm:$0xf] }
  0x17   : > { %136 = vst [vmem:[%s112_s27 + $0x8] sm:$0xf] %v135_v2  ;;  %v143_v6 = vld [vmem:[%s114_s26 + $0x60] sm:$0xf]  ;;  %v145_v7 = vld [vmem:[%s114_s26 + $0x70] sm:$0xf] }
  0x18   : > { %138 = vst [vmem:[%s112_s27 + $0xc] sm:$0xf] %v137_v3 }
  0x19   : > { %140 = vst [vmem:[%s112_s27 + $0x10] sm:$0xf] %v139_v4 }
  0x1a   : > { %142 = vst [vmem:[%s112_s27 + $0x14] sm:$0xf] %v141_v5 }
  0x1b   : > { %144 = vst [vmem:[%s112_s27 + $0x18] sm:$0xf] %v143_v6 }
  0x1c   : > { %146 = vst [vmem:[%s112_s27 + $0x1c] sm:$0xf] %v145_v7 }
  0x1d PF: > { %p351_p10 = scmp.ge.s32.totalorder %s480_s12, 1  ;;  %p185_p11 = scmp.lt.s32.totalorder %s480_s12, 5 }
  0x1f   : > { %p186_p12 = pnand %p351_p10, %p185_p11 }
  0x20   : > { %s552_s28 = sand.u32 (!%p186_p12), 1, %s472_s10   ;;  %s372_s5 = sshll.u32 (!%p186_p12), %s345_s13, 3 }
  0x21   : > { %189 = sbr.rel (%p186_p12) target bundleno = 188 (0xbc), region = 65  ;;  %s352_s29 = sshll.u32 (!%p186_p12), %s552_s28, 5 }
  0x22   : > { %s194_s30 = scalar_lea.vmem (!%p186_p12), [#allocation2], %s352_s29  ;;  %s353_s6 = sshll.u32 (!%p186_p12), %s552_s28, 3 }
  0x23   : > { %s276_s14 = scalar_lea.hbm (!%p186_p12), %s594_s2, %s372_s5  ;;  %s212_s16 = scalar_lea.vmem (!%p186_p12), [#allocation3], %s353_s6 }
  0x24   : > { %s278_s17 = sshll.u32 (!%p186_p12), %s212_s16, 4  ;;  %s280_s21 = sshll.u32 (!%p186_p12), %s276_s14, 4  ;;  %s279_s17 = int_to_ptr.vmem [resolvable:$true] %s278_s17  ;;  %s281_s21 = int_to_ptr.hbm [resolvable:$true] %s280_s21 }
  0x25   : > { %s266_s22 = scalar_lea.sflag (!%p186_p12), [#allocation4], %s552_s28  ;;  %s432_s23 = sshra.s32 (!%p186_p12), %s281_s21, 4  ;;  %s433_s23 = int_to_ptr.hbm [resolvable:$true] %s432_s23 }
  0x26   : > { %v378_v8 = vld [vmem:[%s194_s30 + $0x18] sm:$0xff]  ;;  %v377_v9 = vld [vmem:[%s194_s30 + $0x10] sm:$0xff]  ;;  %v376_v10 = vld [vmem:[%s194_s30 + $0x8] sm:$0xff]  ;;  %vm247_vm0 = vcmask 523264   ;;  %s434_s24 = scalar_lea.hbm %s433_s23, 8  ;;  %s438_s26 = scalar_lea.hbm %s594_s2, 32 }
  0x27   : > { %255 = vmatpush.bf16.msra.mxu0 %v378_v8  ;;  %v375_v11 = vld [vmem:[%s194_s30] sm:$0xff]  ;;  %p435_p13 = scmp.ne.s32.totalorder %s433_s23, %s434_s24  ;;  %p439_p2 = scmp.lt.s32.totalorder %s433_s23, %s594_s2 }
  0x28   : > { %v214_v12 = vld [vmem:[%s592_s0] sm:$0xf]  ;;  %p440_p3 = scmp.lt.s32.totalorder %s438_s26, %s434_s24 }
  0x29   : > { %p436_p0 = pnand %p435_p13, %p535_p6 }
  0x2a   : > { %p441_p4 = por %p440_p3, %p439_p2 }
  0x2b   : > { %256 = vmatpush.bf16.msra.mxu0 %v377_v9  ;;  %p437_p1 = pneg %p436_p0 }
  0x2d   : > { %p442_p5 = pnand %p441_p4, %p437_p1 }
  0x2f   : > { %257 = vmatpush.bf16.msra.mxu0 %v376_v10 }
  0x33   : > { %258 = vmatpush.bf16.msra.mxu0 %v375_v11 }
  0x36   : > { %370 = vmatmul.msk.bf16.vlgmr.msra.gmra.mxu0 %vm247_vm0, %v214_v12 }
  0xb3   : > { %v260_v13 = vpop.f32.mrf.mxu0 }
  0xb4   : > { %264 = vst [vmem:[%s212_s16] sm:$0xff] %v260_v13 }
  0xb5   : > { %445 = shalt.err (!%p442_p5)
}
  0xb6   : > { %379 = dma.vmem_to_hbm [thread:$0]  (%p535_p6), %s279_s17, 128, %s281_s21, %s266_s22  }
  0xbb   : > { %v262_v14 = vpop.f32.mrf.mxu0 }
  0xbc PF: > { %p385_p7 = scmp.ge.s32.totalorder %s480_s12, 2  ;;  %s292_s28 = sand.u32 1, %s468_s9  }
  0xbd   : > { %s293_s30 = scalar_lea.sflag [#allocation4], %s292_s28 }
  0xbe   : > { %p382_p9 = pnand %p385_p7, %p539_p8 }
  0xc0   : > { %p383_p10 = pneg %p382_p9 }
  0xc2   : > { %463 = dma.done.wait (%p383_p10), %s293_s30, 128  }
  0xc3   : > { %465 = vsyncadd (%p383_p10), %s293_s30, 4294967168  ;;  %p12_p11 = scmp.ge.s32.totalorder %s520_s15, 6   ;;  %s597_s9 = smov %s472_s10 }
  0xc4   : > { %s598_s10 = smov %s476_s11  ;;  %s599_s11 = smov %s533_s18 }
  0xc5   : > { %s600_s12 = smov %s520_s15  ;;  %14 = sbr.rel (!%p12_p11) target bundleno = 3 (0x3), region = 109 }
  0xca   :  { %299 = vsyncpa [#allocation4], 1 }
  0xcb   :  { %301 = vsyncpa [#allocation4 + $0x1], 1 }

</bundles_post_ra>
